<compile_context>
chip_gen: v5e
topology: v5e:2x2
jax: 0.10.0
libtpu: 0.0.40
codegen_flags: <defaults>
</compile_context>

<pallas_src>
import jax
import jax.numpy as jnp
from jax.experimental import pallas as pl
from jax.experimental.pallas import tpu as pltpu


def _round_up(x, m):
    return ((x + m - 1) // m) * m


def mlp_kernel(x_ref, w1_ref, b1_ref, w2_ref, b2_ref, o_ref, acc_ref):
    """One (tm, Out_pad) output tile; K-reduction over input features.

    acc_ref accumulates x @ w1 in f32 across the K grid axis. On the final K
    step we add bias1, apply LeakyReLU, run the (small, fully resident) second
    matmul, add bias2 and store the lane-dense output tile.
    """
    k = pl.program_id(1)

    @pl.when(k == 0)
    def _():
        acc_ref[...] = jnp.zeros_like(acc_ref)

    acc_ref[...] += jnp.dot(x_ref[...], w1_ref[...],
                            preferred_element_type=jnp.float32)

    @pl.when(k == pl.num_programs(1) - 1)
    def _():
        h = acc_ref[...] + b1_ref[...].astype(jnp.float32)
        h = jnp.where(h > 0, h, 0.01 * h)                     # LeakyReLU(0.01)
        out = jnp.dot(h.astype(w2_ref.dtype), w2_ref[...],
                      preferred_element_type=jnp.float32)
        out = out + b2_ref[...].astype(jnp.float32)
        o_ref[...] = out.astype(o_ref.dtype)


def prepare_mlp_params(w1, b1, w2, b2, *, compute_dtype=None):
    """One-time layout prep (NOT in the per-call path).

    PyTorch Linear stores weights as [out, in]; we transpose to [in, out] and
    zero-pad the hidden/output lane dims to multiples of 128 and the
    contraction dim to a multiple of the K tile. Optionally casts weights to
    `compute_dtype` (e.g. bf16 on v6e/v7x) while accumulation stays f32.
    """
    hidden, in_features = w1.shape
    out_features = w2.shape[0]
    if compute_dtype is None:
        compute_dtype = w1.dtype

    in_pad = _round_up(in_features, 128)
    tk = in_pad if in_pad <= 512 else 512      # 128-aligned K tile (v5e-friendly)
    in_pad = _round_up(in_pad, tk)
    h_pad = _round_up(hidden, 128)
    o_pad = _round_up(out_features, 128)

    w1_t = jnp.zeros((in_pad, h_pad), compute_dtype)
    w1_t = w1_t.at[:in_features, :hidden].set(w1.T.astype(compute_dtype))
    b1_p = jnp.zeros((1, h_pad), compute_dtype)
    b1_p = b1_p.at[:, :hidden].set(b1.astype(compute_dtype)[None, :])
    w2_t = jnp.zeros((h_pad, o_pad), compute_dtype)
    w2_t = w2_t.at[:hidden, :out_features].set(w2.T.astype(compute_dtype))
    b2_p = jnp.zeros((1, o_pad), compute_dtype)
    b2_p = b2_p.at[:, :out_features].set(b2.astype(compute_dtype)[None, :])

    meta = dict(in_features=in_features, hidden=hidden, out_features=out_features,
                in_pad=in_pad, h_pad=h_pad, o_pad=o_pad, tk=tk)
    return (w1_t, b1_p, w2_t, b2_p), meta


def mlp_forward(x, params, meta, out_dtype=None):
    """x: [B, C, H, W] (NCHW) or already-flat [B, In]. Returns [B, Out]."""
    w1_t, b1_p, w2_t, b2_p = params
    in_features = meta["in_features"]
    out_features = meta["out_features"]
    in_pad, h_pad, o_pad, tk = meta["in_pad"], meta["h_pad"], meta["o_pad"], meta["tk"]

    B = x.shape[0]
    x_flat = x.reshape(B, -1)                          # x.view(x.size(0), -1)
    assert x_flat.shape[1] == in_features
    if out_dtype is None:
        out_dtype = x_flat.dtype
    cdt = w1_t.dtype                                   # compute dtype of matmul operands

    # Pad batch to the sublane granularity and pick the M tile.
    sub = 16 if cdt == jnp.bfloat16 else 8
    b_pad = _round_up(B, sub)
    tm = min(b_pad, 256)
    b_pad = _round_up(b_pad, tm)

    x_p = jnp.zeros((b_pad, in_pad), cdt)
    x_p = x_p.at[:B, :in_features].set(x_flat.astype(cdt))

    grid = (b_pad // tm, in_pad // tk)

    itemsize = jnp.dtype(cdt).itemsize
    flops = 2 * b_pad * (in_pad * h_pad + h_pad * o_pad)
    bytes_accessed = ((b_pad * in_pad + in_pad * h_pad + h_pad * o_pad
                       + h_pad + o_pad) * itemsize
                      + b_pad * o_pad * jnp.dtype(out_dtype).itemsize)

    out_p = pl.pallas_call(
        mlp_kernel,
        out_shape=jax.ShapeDtypeStruct((b_pad, o_pad), out_dtype),
        grid_spec=pltpu.PrefetchScalarGridSpec(
            num_scalar_prefetch=0,
            grid=grid,
            in_specs=[
                pl.BlockSpec((tm, tk), lambda i, k: (i, k)),        # x tile
                pl.BlockSpec((tk, h_pad), lambda i, k: (k, 0)),     # w1 K-slab
                pl.BlockSpec((1, h_pad), lambda i, k: (0, 0)),      # b1
                pl.BlockSpec((h_pad, o_pad), lambda i, k: (0, 0)),  # w2 (resident)
                pl.BlockSpec((1, o_pad), lambda i, k: (0, 0)),      # b2
            ],
            out_specs=pl.BlockSpec((tm, o_pad), lambda i, k: (i, 0)),
            scratch_shapes=[pltpu.VMEM((tm, h_pad), jnp.float32)],  # f32 accumulator
        ),
        compiler_params=pltpu.CompilerParams(
            dimension_semantics=("parallel", "arbitrary"),
        ),
        cost_estimate=pl.CostEstimate(
            flops=flops, transcendentals=0, bytes_accessed=bytes_accessed),
    )(x_p, w1_t, b1_p, w2_t, b2_p)

    # Slice off padded batch rows and padded output lanes.
    return out_p[:B, :out_features]


def init_mlp_params(key, input_size, hidden_size, output_size, dtype=jnp.float32):
    """Deterministic init mirroring nn.Linear's uniform(-1/sqrt(fan_in), 1/sqrt(fan_in))."""
    k1, k2, k3, k4 = jax.random.split(key, 4)
    bound1 = 1.0 / (input_size ** 0.5)
    bound2 = 1.0 / (hidden_size ** 0.5)
    w1 = jax.random.uniform(k1, (hidden_size, input_size), dtype, -bound1, bound1)
    b1 = jax.random.uniform(k2, (hidden_size,), dtype, -bound1, bound1)
    w2 = jax.random.uniform(k3, (output_size, hidden_size), dtype, -bound2, bound2)
    b2 = jax.random.uniform(k4, (output_size,), dtype, -bound2, bound2)
    return w1, b1, w2, b2


if __name__ == "__main__":
    key = jax.random.PRNGKey(0)
    kx, kp = jax.random.split(key)

    # Small shapes: batch=2, channels=4, spatial=16 -> input_size = 4*16*16 = 1024
    B, C, H, W = 2, 4, 16, 16
    input_size = C * H * W
    hidden_size = 32
    output_size = 16

    x = jax.random.normal(kx, (B, C, H, W), dtype=jnp.float32)
    w1, b1, w2, b2 = init_mlp_params(kp, input_size, hidden_size, output_size)

    # One-time layout prep (transpose + pad). Keep f32 here so the check against
    # the f32 reference is tight; pass compute_dtype=jnp.bfloat16 on v6e/v7x
    # when the accuracy budget allows (accumulation stays f32 either way).
    params, meta = prepare_mlp_params(w1, b1, w2, b2)

    out = mlp_forward(x, params, meta)
    out = jax.block_until_ready(out)

    # Reference check in plain JAX (same math as the PyTorch module).
    x_flat = x.reshape(B, -1)
    h_ref = x_flat @ w1.T + b1
    h_ref = jnp.where(h_ref > 0, h_ref, 0.01 * h_ref)
    ref = h_ref @ w2.T + b2
    assert out.shape == (B, output_size)
    assert jnp.allclose(out, ref, atol=1e-5, rtol=1e-5)

    print("KERNEL_OK")
</pallas_src>

<mosaic_0001>
module attributes {stable_mosaic.version = 11 : i64} {
  func.func @mlp_kernel(%arg0: i32, %arg1: i32, %arg2: memref<8x512xf32, #tpu.memory_space<vmem>>, %arg3: memref<512x128xf32, #tpu.memory_space<vmem>>, %arg4: memref<1x128xf32, #tpu.memory_space<vmem>>, %arg5: memref<128x128xf32, #tpu.memory_space<vmem>>, %arg6: memref<1x128xf32, #tpu.memory_space<vmem>>, %arg7: memref<8x128xf32, #tpu.memory_space<vmem>>, %arg8: memref<8x128xf32, #tpu.memory_space<vmem>>) attributes {dimension_semantics = [#tpu.dimension_semantics<parallel>, #tpu.dimension_semantics<arbitrary>], iteration_bounds = array<i64: 1, 2>, scalar_prefetch = 0 : i64, scratch_operands = 1 : i64, tpu.core_type = #tpu.core_type<tc>, window_params = [{transform_indices = @transform_0, window_bounds = array<i64: 8, 512>}, {transform_indices = @transform_1, window_bounds = array<i64: 512, 128>}, {pipeline_mode = #tpu.pipeline_mode<synchronous>, transform_indices = @transform_2, window_bounds = array<i64: 1, 128>}, {pipeline_mode = #tpu.pipeline_mode<synchronous>, transform_indices = @transform_3, window_bounds = array<i64: 128, 128>}, {pipeline_mode = #tpu.pipeline_mode<synchronous>, transform_indices = @transform_4, window_bounds = array<i64: 1, 128>}, {transform_indices = @transform_5, window_bounds = array<i64: 8, 128>}]} {
    %c0_i32 = arith.constant 0 : i32
    %0 = arith.cmpi eq, %arg1, %c0_i32 : i32
    %1 = arith.extui %0 : i1 to i32
    %c0_i32_0 = arith.constant 0 : i32
    %2 = arith.cmpi ne, %1, %c0_i32_0 : i32
    scf.if %2 {
      %cst_9 = arith.constant 0.000000e+00 : f32
      %12 = vector.broadcast %cst_9 : f32 to vector<8x128xf32>
      %c0_10 = arith.constant 0 : index
      %c0_11 = arith.constant 0 : index
      %13 = vector.load %arg8[%c0_10, %c0_11] : memref<8x128xf32, #tpu.memory_space<vmem>>, vector<8x128xf32>
      tpu.vector_store %arg8[%c0_10, %c0_11], %12 {strides = array<i32>} : memref<8x128xf32, #tpu.memory_space<vmem>>, vector<8x128xf32>,
    } else {
    }
    %c0 = arith.constant 0 : index
    %c0_1 = arith.constant 0 : index
    %3 = vector.load %arg8[%c0, %c0_1] : memref<8x128xf32, #tpu.memory_space<vmem>>, vector<8x128xf32>
    %c0_2 = arith.constant 0 : index
    %c0_3 = arith.constant 0 : index
    %4 = vector.load %arg2[%c0_2, %c0_3] : memref<8x512xf32, #tpu.memory_space<vmem>>, vector<8x512xf32>
    %c0_4 = arith.constant 0 : index
    %c0_5 = arith.constant 0 : index
    %5 = vector.load %arg3[%c0_4, %c0_5] : memref<512x128xf32, #tpu.memory_space<vmem>>, vector<512x128xf32>
    %cst = arith.constant dense<0.000000e+00> : vector<8x128xf32>
    %6 = tpu.matmul %4, %5, %cst {dimension_numbers = #tpu.dot_dimension_numbers<[1], [0], [0], [1], [0, 0, 1, 1], [], []>} : vector<8x512xf32>, vector<512x128xf32>, vector<8x128xf32> -> vector<8x128xf32>
    %7 = arith.addf %3, %6 : vector<8x128xf32>
    %c0_6 = arith.constant 0 : index
    %c0_7 = arith.constant 0 : index
    %8 = vector.load %arg8[%c0_6, %c0_7] : memref<8x128xf32, #tpu.memory_space<vmem>>, vector<8x128xf32>
    tpu.vector_store %arg8[%c0_6, %c0_7], %7 {strides = array<i32>} : memref<8x128xf32, #tpu.memory_space<vmem>>, vector<8x128xf32>,
    %c1_i32 = arith.constant 1 : i32
    %9 = arith.cmpi eq, %arg1, %c1_i32 : i32
    %10 = arith.extui %9 : i1 to i32
    %c0_i32_8 = arith.constant 0 : i32
    %11 = arith.cmpi ne, %10, %c0_i32_8 : i32
    scf.if %11 {
      %c0_9 = arith.constant 0 : index
      %c0_10 = arith.constant 0 : index
      %12 = vector.load %arg8[%c0_9, %c0_10] : memref<8x128xf32, #tpu.memory_space<vmem>>, vector<8x128xf32>
      %c0_11 = arith.constant 0 : index
      %c0_12 = arith.constant 0 : index
      %13 = vector.load %arg4[%c0_11, %c0_12] : memref<1x128xf32, #tpu.memory_space<vmem>>, vector<1x128xf32>
      %14 = vector.broadcast %13 : vector<1x128xf32> to vector<8x128xf32>
      %15 = arith.addf %12, %14 : vector<8x128xf32>
      %cst_13 = arith.constant 0.000000e+00 : f32
      %16 = vector.broadcast %cst_13 : f32 to vector<8x128xf32>
      %17 = arith.cmpf ogt, %15, %16 : vector<8x128xf32>
      %cst_14 = arith.constant 0.00999999977 : f32
      %18 = vector.broadcast %cst_14 : f32 to vector<8x128xf32>
      %19 = arith.mulf %18, %15 : vector<8x128xf32>
      %20 = arith.select %17, %15, %19 : vector<8x128xi1>, vector<8x128xf32>
      %c0_15 = arith.constant 0 : index
      %c0_16 = arith.constant 0 : index
      %21 = vector.load %arg5[%c0_15, %c0_16] : memref<128x128xf32, #tpu.memory_space<vmem>>, vector<128x128xf32>
      %cst_17 = arith.constant dense<0.000000e+00> : vector<8x128xf32>
      %22 = tpu.matmul %20, %21, %cst_17 {dimension_numbers = #tpu.dot_dimension_numbers<[1], [0], [0], [1], [0, 0, 1, 1], [], []>} : vector<8x128xf32>, vector<128x128xf32>, vector<8x128xf32> -> vector<8x128xf32>
      %c0_18 = arith.constant 0 : index
      %c0_19 = arith.constant 0 : index
      %23 = vector.load %arg6[%c0_18, %c0_19] : memref<1x128xf32, #tpu.memory_space<vmem>>, vector<1x128xf32>
      %24 = vector.broadcast %23 : vector<1x128xf32> to vector<8x128xf32>
      %25 = arith.addf %22, %24 : vector<8x128xf32>
      %c0_20 = arith.constant 0 : index
      %c0_21 = arith.constant 0 : index
      %26 = vector.load %arg7[%c0_20, %c0_21] : memref<8x128xf32, #tpu.memory_space<vmem>>, vector<8x128xf32>
      tpu.vector_store %arg7[%c0_20, %c0_21], %25 {strides = array<i32>} : memref<8x128xf32, #tpu.memory_space<vmem>>, vector<8x128xf32>,
    } else {
    }
    return
  }
  func.func @transform_0(%arg0: i32, %arg1: i32) -> (i32, i32) {
    %c0_i32 = arith.constant 0 : i32
    return %arg0, %arg1 : i32, i32
  }
  func.func @transform_1(%arg0: i32, %arg1: i32) -> (i32, i32) {
    %c0_i32 = arith.constant 0 : i32
    %c0_i32_0 = arith.constant 0 : i32
    return %arg1, %c0_i32 : i32, i32
  }
  func.func @transform_2(%arg0: i32, %arg1: i32) -> (i32, i32) {
    %c0_i32 = arith.constant 0 : i32
    %c0_i32_0 = arith.constant 0 : i32
    %c0_i32_1 = arith.constant 0 : i32
    return %c0_i32, %c0_i32_0 : i32, i32
  }
  func.func @transform_3(%arg0: i32, %arg1: i32) -> (i32, i32) {
    %c0_i32 = arith.constant 0 : i32
    %c0_i32_0 = arith.constant 0 : i32
    %c0_i32_1 = arith.constant 0 : i32
    return %c0_i32, %c0_i32_0 : i32, i32
  }
  func.func @transform_4(%arg0: i32, %arg1: i32) -> (i32, i32) {
    %c0_i32 = arith.constant 0 : i32
    %c0_i32_0 = arith.constant 0 : i32
    %c0_i32_1 = arith.constant 0 : i32
    return %c0_i32, %c0_i32_0 : i32, i32
  }
  func.func @transform_5(%arg0: i32, %arg1: i32) -> (i32, i32) {
    %c0_i32 = arith.constant 0 : i32
    %c0_i32_0 = arith.constant 0 : i32
    return %arg0, %c0_i32 : i32, i32
  }
}

</mosaic_0001>

<bundles_post_ra>
// kernel: tpu_custom_call.1
= control target key start
LH: loop header
LB: loop body
LE: loop exit
PB: predicated region body
PF: predicated region fallthrough
CT: control target
= control target key end

     0   :  { %s1161_s0 = inlined_call_operand.hbm [shape: f32[8,1024], index: 0, kind: input, shape index: {}]   ;;  %s1162_s1 = inlined_call_operand.hbm [shape: f32[1024,128], index: 1, kind: input, shape index: {}]   ;;  %s1163_s2 = inlined_call_operand.vmem [shape: f32[1,128], index: 2, kind: input, shape index: {}]   ;;  %s1164_s3 = inlined_call_operand.hbm [shape: f32[128,128], index: 3, kind: input, shape index: {}]   ;;  %s1165_s4 = inlined_call_operand.vmem [shape: f32[1,128], index: 4, kind: input, shape index: {}]   ;;  %s1166_s5 = inlined_call_operand.hbm [shape: f32[8,128], index: 5, kind: output, shape index: {}]  }
   0x1   :  { %1170 = sst [smem:[#allocation16_spill]] %s1164_s3 }
   0x2   :  { %10 = vsyncpa [#allocation4], 0 }
   0x3   :  { %12 = vsyncpa [#allocation4 + $0x1], 0 }
   0x4   :  { %13 = vsyncpa [#allocation7], 0 }
   0x5   :  { %15 = vsyncpa [#allocation7 + $0x1], 0 }
   0x6   :  { %16 = vsyncpa [#allocation5], 0  ;;  %s951_s18 = smov 0   ;;  %s953_s19 = smov 0  }
   0x7   :  { %s955_s20 = smov 0   ;;  %s957_s21 = smov 0  }
   0x8   :  { %s959_s22 = smov 0   ;;  %s961_s23 = smov 0  }
   0x9 LB: > { %s982_s24 = sadd.s32 4294967295, %s914_s23   ;;  %p630_p0 = scmp.ge.s32.totalorder %s914_s23, 1  ;;  %s914_s23 = sphi %s961_s23, %s22_s23   ;;  %s910_s22 = sphi %s959_s22, %s1185_s22   ;;  %s906_s21 = sphi %s957_s21, %s1184_s21   ;;  %s902_s20 = sphi %s955_s20, %s1183_s20   ;;  %s898_s19 = sphi %s953_s19, %s1182_s19   ;;  %s894_s18 = sphi %s951_s18, %s1181_s18  }
   0xa   : > { %p57_p1 = scmp.eq.s32.totalorder %s982_s24, 0  ;;  %p182_p2 = scmp.lt.s32.totalorder %s914_s23, 3 }
   0xb   : > { %s1171_s3 = sld [smem:[#allocation16_spill]]  ;;  %s916_s29 = smov [#allocation8]  }
   0xc   : > { %p990_p3 = pnand %p630_p0, %p182_p2  ;;  %s198_s30 = sshll.u32 %s916_s29, 4  ;;  %s199_s30 = int_to_ptr.vmem [resolvable:$true] %s198_s30 }
   0xd   : > { %s1167_s6 = smov 128   ;;  %s1168_s7 = smov 8  }
   0xe   : > { %p663_p4 = pneg %p990_p3  ;;  %s31_s8 = sadd.s32 1, %s910_s22 }
   0xf   : > { %p32_p6 = scmp.ge.s32.totalorder %s31_s8, 2  ;;  %s43_s9 = sadd.s32 1, %s902_s20 }
  0x10   : > { %p664_p5 = pnand %p663_p4, %p57_p1  ;;  %p50_p7 = scmp.ne.s32.totalorder %s902_s20, %s898_s19 }
  0x11   : > { %s196_s27 = sshll.u32 %s1171_s3, 4  ;;  %p51_p8 = scmp.eq.s32.totalorder %s914_s23, 0  ;;  %s197_s27 = int_to_ptr.hbm [resolvable:$true] %s196_s27 }
  0x12   : > { %666 = dma.hbm_to_vmem [thread:$0]  (!%p664_p5), %s197_s27, 2048, %s199_s30, [#allocation7], %s1167_s6, %s1167_s6, %s1168_s7  }
  0x13   : > { %s1187_s8 = smov (%p32_p6, %s31_s8), 0  ;;  %p1008_p9 = por %p51_p8, %p50_p7 }
  0x14   : > { %1173 = sst [smem:[#allocation14_spill]] %s1187_s8  ;;  %p56_p10 = scmp.ne.s32.totalorder %s898_s19, %s894_s18 }
  0x15   : > { %s39_s11 = ssub.s32 %s910_s22, %s1187_s8  ;;  %p675_p11 = scmp.lt.s32.totalorder %s914_s23, 2 }
  0x16   : > { %p41_p12 = scmp.eq.s32.totalorder %s39_s11, 0  ;;  %p1019_p13 = por %p57_p1, %p56_p10 }
  0x17   : > { %s215_s13 = sand.u32 1, %s902_s20   ;;  %s649_s14 = sshll.u32 %s910_s22, 5 }
  0x18   : > { %s1026_s15 = scalar_select %p41_p12, %s902_s20, %s43_s9  }
  0x19   : > { %s633_s16 = sshll.u32 %s215_s13, 5  ;;  %s226_s26 = scalar_lea.hbm %s1161_s0, %s649_s14 }
  0x1a   : > { %1176 = sst [smem:[#allocation15_spill]] %s1026_s15  ;;  %s228_s18 = sshll.u32 %s226_s26, 4  ;;  %s229_s18 = int_to_ptr.hbm [resolvable:$true] %s228_s18 }
  0x1b   : > { %s219_s27 = scalar_lea.vmem [#allocation3], %s633_s16  ;;  %p668_p0 = pnand %p675_p11, %p1008_p9 }
  0x1c   : > { %s230_s29 = sshll.u32 %s219_s27, 4  ;;  %s636_s30 = sshll.u32 %s215_s13, 9  ;;  %s231_s29 = int_to_ptr.vmem [resolvable:$true] %s230_s29 }
  0x1d   : > { %s650_s11 = sshll.u32 %s910_s22, 9  ;;  %s241_s6 = scalar_lea.vmem [#allocation6], %s636_s30 }
  0x1e   : > { %s249_s7 = sshll.u32 %s241_s6, 4  ;;  %s216_s9 = scalar_lea.sflag [#allocation4], %s215_s13  ;;  %s250_s7 = int_to_ptr.vmem [resolvable:$true] %s249_s7 }
  0x1f   : > { %670 = dma.hbm_to_vmem [thread:$0]  (!%p668_p0), %s229_s18, 512, %s231_s29, %s216_s9  }
  0x20   : > { %s237_s3 = sand.u32 1, %s914_s23   ;;  %s246_s14 = scalar_lea.hbm %s1162_s1, %s650_s11 }
  0x21   : > { %s247_s17 = sshll.u32 %s246_s14, 4  ;;  %s238_s16 = scalar_lea.sflag [#allocation7], %s237_s3  ;;  %s248_s17 = int_to_ptr.hbm [resolvable:$true] %s247_s17 }
  0x22   : > { %s1177_s25 = smov 8   ;;  %s1178_s26 = smov 128  }
  0x23   : > { %673 = dma.hbm_to_vmem [thread:$0]  (!%p668_p0), %s248_s17, 8192, %s250_s7, %s238_s16, %s1178_s26, %s1178_s26, %s1177_s25  }
  0x24   : > { %261 = sbr.rel (%p990_p3) target bundleno = 395 (0x18b), region = 40  ;;  %s263_s6 = sand.u32 (!%p990_p3), 1, %s898_s19  }
  0x25   : > { %s640_s10 = sshll.u32 (!%p990_p3), %s263_s6, 5  ;;  %s264_s13 = scalar_lea.sflag (!%p990_p3), [#allocation4], %s263_s6 }
  0x26   : > { %s1046_s18 = scalar_lea.vmem (!%p990_p3), [#allocation3], %s640_s10 }
  0x29   : > { %877 = dma.done.wait (%p1019_p13), %s264_s13, 512  }
  0x2a   : > { %879 = vsyncadd (%p1019_p13), %s264_s13, 4294966784  ;;  %s273_s3 = sand.u32 1, %s982_s24   ;;  %s641_s8 = sshll.u32 %s263_s6, 9 }
  0x2b   : > { %s274_s7 = scalar_lea.sflag [#allocation7], %s273_s3  ;;  %s1053_s15 = scalar_lea.vmem [#allocation6], %s641_s8 }
  0x2c   : > { %881 = dma.done.wait (%p1019_p13), %s274_s7, 8192  }
  0x2d   : > { %883 = vsyncadd (%p1019_p13), %s274_s7, 4294959104 }
  0x2e   : > { %885 = dma.done.wait (%p57_p1), [#allocation7], 2048  }
  0x2f   : > { %887 = vsyncadd (%p57_p1), [#allocation7], 4294965248  ;;  %p643_p2 = scmp.ne.s32.totalorder %s906_s21, 0 }
  0x31   : > { %315 = sbr.rel (%p643_p2) target bundleno = 56 (0x38), region = 56 }
  0x36   : > { %v919_v0 = vmov 0.0  }
  0x37   : > { %316 = vst [vmem:[#allocation2] sm:$0xff] %v919_v0 }
  0x38 PF: > { %v369_v1 = vld [vmem:[%s1053_s15 + $0x178] sm:$0xff]  ;;  %v368_v2 = vld [vmem:[%s1053_s15 + $0x170] sm:$0xff]  ;;  %v367_v6 = vld [vmem:[%s1053_s15 + $0x168] sm:$0xff]  ;;  %p644_p1 = scmp.ne.s32.totalorder %s906_s21, 1 }
  0x39   : > { %v385_v3 = vld [vmem:[%s1053_s15 + $0x1f8] sm:$0xff]  ;;  %426 = vmatpush.msra.mxu2 %v369_v1  ;;  %v384_v7 = vld [vmem:[%s1053_s15 + $0x1f0] sm:$0xff]  ;;  %v383_v10 = vld [vmem:[%s1053_s15 + $0x1e8] sm:$0xff] }
  0x3a   : > { %446 = vmatpush.msra.mxu3 %v385_v3  ;;  %v337_v4 = vld [vmem:[%s1053_s15 + $0x78] sm:$0xff]  ;;  %v336_v8 = vld [vmem:[%s1053_s15 + $0x70] sm:$0xff]  ;;  %v335_v11 = vld [vmem:[%s1053_s15 + $0x68] sm:$0xff] }
  0x3b   : > { %v353_v5 = vld [vmem:[%s1053_s15 + $0xf8] sm:$0xff]  ;;  %386 = vmatpush.msra.mxu0 %v337_v4  ;;  %v352_v9 = vld [vmem:[%s1053_s15 + $0xf0] sm:$0xff]  ;;  %427 = vmatpush.msra.mxu2 %v368_v2  ;;  %v366_v12 = vld [vmem:[%s1053_s15 + $0x160] sm:$0xff] }
  0x3c   : > { %406 = vmatpush.msra.mxu1 %v353_v5  ;;  %447 = vmatpush.msra.mxu3 %v384_v7  ;;  %v351_v13 = vld [vmem:[%s1053_s15 + $0xe8] sm:$0xff]  ;;  %v382_v14 = vld [vmem:[%s1053_s15 + $0x1e0] sm:$0xff]  ;;  %v365_v17 = vld [vmem:[%s1053_s15 + $0x158] sm:$0xff] }
  0x3d   : > { %387 = vmatpush.msra.mxu0 %v336_v8  ;;  %428 = vmatpush.msra.mxu2 %v367_v6  ;;  %v334_v15 = vld [vmem:[%s1053_s15 + $0x60] sm:$0xff]  ;;  %v381_v18 = vld [vmem:[%s1053_s15 + $0x1d8] sm:$0xff]  ;;  %v364_v21 = vld [vmem:[%s1053_s15 + $0x150] sm:$0xff] }
  0x3e   : > { %407 = vmatpush.msra.mxu1 %v352_v9  ;;  %448 = vmatpush.msra.mxu3 %v383_v10  ;;  %v350_v16 = vld [vmem:[%s1053_s15 + $0xe0] sm:$0xff]  ;;  %v333_v19 = vld [vmem:[%s1053_s15 + $0x58] sm:$0xff]  ;;  %v380_v22 = vld [vmem:[%s1053_s15 + $0x1d0] sm:$0xff] }
  0x3f   : > { %388 = vmatpush.msra.mxu0 %v335_v11  ;;  %429 = vmatpush.msra.mxu2 %v366_v12  ;;  %v349_v20 = vld [vmem:[%s1053_s15 + $0xd8] sm:$0xff]  ;;  %v332_v23 = vld [vmem:[%s1053_s15 + $0x50] sm:$0xff]  ;;  %v363_v25 = vld [vmem:[%s1053_s15 + $0x148] sm:$0xff] }
  0x40   : > { %408 = vmatpush.msra.mxu1 %v351_v13  ;;  %449 = vmatpush.msra.mxu3 %v382_v14  ;;  %v348_v24 = vld [vmem:[%s1053_s15 + $0xd0] sm:$0xff]  ;;  %v379_v26 = vld [vmem:[%s1053_s15 + $0x1c8] sm:$0xff]  ;;  %v362_v29 = vld [vmem:[%s1053_s15 + $0x140] sm:$0xff] }
  0x41   : > { %389 = vmatpush.msra.mxu0 %v334_v15  ;;  %430 = vmatpush.msra.mxu2 %v365_v17  ;;  %v331_v27 = vld [vmem:[%s1053_s15 + $0x48] sm:$0xff]  ;;  %v378_v30 = vld [vmem:[%s1053_s15 + $0x1c0] sm:$0xff]  ;;  %v361_v33 = vld [vmem:[%s1053_s15 + $0x138] sm:$0xff] }
  0x42   : > { %409 = vmatpush.msra.mxu1 %v350_v16  ;;  %450 = vmatpush.msra.mxu3 %v381_v18  ;;  %v347_v28 = vld [vmem:[%s1053_s15 + $0xc8] sm:$0xff]  ;;  %v330_v31 = vld [vmem:[%s1053_s15 + $0x40] sm:$0xff]  ;;  %v377_v34 = vld [vmem:[%s1053_s15 + $0x1b8] sm:$0xff] }
  0x43   : > { %390 = vmatpush.msra.mxu0 %v333_v19  ;;  %431 = vmatpush.msra.mxu2 %v364_v21  ;;  %v346_v32 = vld [vmem:[%s1053_s15 + $0xc0] sm:$0xff]  ;;  %v329_v35 = vld [vmem:[%s1053_s15 + $0x38] sm:$0xff]  ;;  %v360_v37 = vld [vmem:[%s1053_s15 + $0x130] sm:$0xff] }
  0x44   : > { %410 = vmatpush.msra.mxu1 %v349_v20  ;;  %451 = vmatpush.msra.mxu3 %v380_v22  ;;  %v345_v36 = vld [vmem:[%s1053_s15 + $0xb8] sm:$0xff]  ;;  %v376_v38 = vld [vmem:[%s1053_s15 + $0x1b0] sm:$0xff]  ;;  %v359_v41 = vld [vmem:[%s1053_s15 + $0x128] sm:$0xff] }
  0x45   : > { %391 = vmatpush.msra.mxu0 %v332_v23  ;;  %432 = vmatpush.msra.mxu2 %v363_v25  ;;  %v328_v39 = vld [vmem:[%s1053_s15 + $0x30] sm:$0xff]  ;;  %v375_v42 = vld [vmem:[%s1053_s15 + $0x1a8] sm:$0xff]  ;;  %v358_v45 = vld [vmem:[%s1053_s15 + $0x120] sm:$0xff] }
  0x46   : > { %411 = vmatpush.msra.mxu1 %v348_v24  ;;  %452 = vmatpush.msra.mxu3 %v379_v26  ;;  %v344_v40 = vld [vmem:[%s1053_s15 + $0xb0] sm:$0xff]  ;;  %v327_v43 = vld [vmem:[%s1053_s15 + $0x28] sm:$0xff]  ;;  %v374_v46 = vld [vmem:[%s1053_s15 + $0x1a0] sm:$0xff] }
  0x47   : > { %392 = vmatpush.msra.mxu0 %v331_v27  ;;  %433 = vmatpush.msra.mxu2 %v362_v29  ;;  %v343_v44 = vld [vmem:[%s1053_s15 + $0xa8] sm:$0xff]  ;;  %v326_v47 = vld [vmem:[%s1053_s15 + $0x20] sm:$0xff]  ;;  %v357_v49 = vld [vmem:[%s1053_s15 + $0x118] sm:$0xff] }
  0x48   : > { %412 = vmatpush.msra.mxu1 %v347_v28  ;;  %453 = vmatpush.msra.mxu3 %v378_v30  ;;  %v342_v48 = vld [vmem:[%s1053_s15 + $0xa0] sm:$0xff]  ;;  %v373_v50 = vld [vmem:[%s1053_s15 + $0x198] sm:$0xff]  ;;  %v356_v53 = vld [vmem:[%s1053_s15 + $0x110] sm:$0xff] }
  0x49   : > { %393 = vmatpush.msra.mxu0 %v330_v31  ;;  %434 = vmatpush.msra.mxu2 %v361_v33  ;;  %v325_v51 = vld [vmem:[%s1053_s15 + $0x18] sm:$0xff]  ;;  %v372_v54 = vld [vmem:[%s1053_s15 + $0x190] sm:$0xff]  ;;  %v355_v57 = vld [vmem:[%s1053_s15 + $0x108] sm:$0xff] }
  0x4a   : > { %413 = vmatpush.msra.mxu1 %v346_v32  ;;  %454 = vmatpush.msra.mxu3 %v377_v34  ;;  %v341_v52 = vld [vmem:[%s1053_s15 + $0x98] sm:$0xff]  ;;  %v324_v55 = vld [vmem:[%s1053_s15 + $0x10] sm:$0xff]  ;;  %v371_v58 = vld [vmem:[%s1053_s15 + $0x188] sm:$0xff] }
  0x4b   : > { %394 = vmatpush.msra.mxu0 %v329_v35  ;;  %435 = vmatpush.msra.mxu2 %v360_v37  ;;  %v340_v56 = vld [vmem:[%s1053_s15 + $0x90] sm:$0xff]  ;;  %v323_v59 = vld [vmem:[%s1053_s15 + $0x8] sm:$0xff]  ;;  %v354_v61 = vld [vmem:[%s1053_s15 + $0x100] sm:$0xff] }
  0x4c   : > { %414 = vmatpush.msra.mxu1 %v345_v36  ;;  %455 = vmatpush.msra.mxu3 %v376_v38  ;;  %v339_v60 = vld [vmem:[%s1053_s15 + $0x88] sm:$0xff]  ;;  %v370_v62 = vld [vmem:[%s1053_s15 + $0x180] sm:$0xff]  ;;  %v320_v63 = vld [vmem:[%s1046_s18 + $0x10] sm:$0xff] }
  0x4d   : > { %395 = vmatpush.msra.mxu0 %v328_v39  ;;  %436 = vmatpush.msra.mxu2 %v359_v41  ;;  %v321_v0 = vld [vmem:[%s1046_s18 + $0x18] sm:$0xff]  ;;  %v322_v1 = vld [vmem:[%s1053_s15] sm:$0xff]  ;;  %v319_v4 = vld [vmem:[%s1046_s18 + $0x8] sm:$0xff] }
  0x4e   : > { %415 = vmatpush.msra.mxu1 %v344_v40  ;;  %456 = vmatpush.msra.mxu3 %v375_v42  ;;  %v338_v2 = vld [vmem:[%s1053_s15 + $0x80] sm:$0xff]  ;;  %v317_v11 = vld [vmem:[#allocation2] sm:$0xff] }
  0x4f   : > { %396 = vmatpush.msra.mxu0 %v327_v43  ;;  %437 = vmatpush.msra.mxu2 %v358_v45  ;;  %v318_v3 = vld [vmem:[%s1046_s18] sm:$0xff] }
  0x50   : > { %416 = vmatpush.msra.mxu1 %v343_v44  ;;  %457 = vmatpush.msra.mxu3 %v374_v46 }
  0x51   : > { %397 = vmatpush.msra.mxu0 %v326_v47  ;;  %438 = vmatpush.msra.mxu2 %v357_v49 }
  0x52   : > { %417 = vmatpush.msra.mxu1 %v342_v48  ;;  %458 = vmatpush.msra.mxu3 %v373_v50 }
  0x53   : > { %398 = vmatpush.msra.mxu0 %v325_v51  ;;  %439 = vmatpush.msra.mxu2 %v356_v53 }
  0x54   : > { %418 = vmatpush.msra.mxu1 %v341_v52  ;;  %459 = vmatpush.msra.mxu3 %v372_v54 }
  0x55   : > { %399 = vmatpush.msra.mxu0 %v324_v55  ;;  %440 = vmatpush.msra.mxu2 %v355_v57 }
  0x56   : > { %419 = vmatpush.msra.mxu1 %v340_v56  ;;  %460 = vmatpush.msra.mxu3 %v371_v58 }
  0x57   : > { %400 = vmatpush.msra.mxu0 %v323_v59  ;;  %441 = vmatpush.msra.mxu2 %v354_v61 }
  0x58   : > { %420 = vmatpush.msra.mxu1 %v339_v60  ;;  %461 = vmatpush.msra.mxu3 %v370_v62 }
  0x59   : > { %442 = vmatmul.f32.vlgmr.msra.gmra.mxu2 %v320_v63  ;;  %462 = vmatmul.f32.vlgmr.msra.gmra.mxu3 %v321_v0 }
  0x5a   : > { %401 = vmatpush.msra.mxu0 %v322_v1  ;;  %421 = vmatpush.msra.mxu1 %v338_v2 }
  0x5b   : > { %402 = vmatmul.f32.vlgmr.msra.gmra.mxu0 %v318_v3  ;;  %422 = vmatmul.f32.vlgmr.msra.gmra.mxu1 %v319_v4 }
  0xd8   : > { %v403_v5 = vpop.f32.mrf.mxu0  ;;  %v423_v6 = vpop.f32.mrf.mxu1 }
  0xd9   : > { %v424_v7 = vadd.f32 %v423_v6, %v403_v5 }
  0xdc   : > { %v443_v8 = vpop.f32.mrf.mxu2  ;;  %v463_v9 = vpop.f32.mrf.mxu3 }
  0xdd   : > { %v444_v10 = vadd.f32 %v443_v8, %v424_v7 }
  0xdf   : > { %v464_v12 = vadd.f32 %v463_v9, %v444_v10  ;;  %471 = sbr.rel (%p644_p1) target bundleno = 389 (0x185), region = 60 }
  0xe1   : > { %v466_v13 = vadd.f32 %v464_v12, %v317_v11 }
  0xe3   : > { %467 = vst [vmem:[#allocation2] sm:$0xff] %v466_v13 }
  0xe4   : > { %v496_v14 = vld [vmem:[#allocation8 + $0x78] sm:$0xff]  ;;  %v495_v15 = vld [vmem:[#allocation8 + $0x70] sm:$0xff]  ;;  %v494_v16 = vld [vmem:[#allocation8 + $0x68] sm:$0xff] }
  0xe5   : > { %501 = vmatpush.msra.mxu0 %v496_v14  ;;  %v493_v17 = vld [vmem:[#allocation8 + $0x60] sm:$0xff]  ;;  %v492_v18 = vld [vmem:[#allocation8 + $0x58] sm:$0xff]  ;;  %v491_v19 = vld [vmem:[#allocation8 + $0x50] sm:$0xff] }
  0xe6   : > { %v490_v20 = vld [vmem:[#allocation8 + $0x48] sm:$0xff]  ;;  %v489_v21 = vld [vmem:[#allocation8 + $0x40] sm:$0xff]  ;;  %v488_v22 = vld [vmem:[#allocation8 + $0x38] sm:$0xff] }
  0xe7   : > { %502 = vmatpush.msra.mxu0 %v495_v15  ;;  %v487_v23 = vld [vmem:[#allocation8 + $0x30] sm:$0xff]  ;;  %v732_v24 = vld [vmem:[%s1163_s2] ss:$0 sm:$0xff]  ;;  %v486_v25 = vld [vmem:[#allocation8 + $0x28] sm:$0xff] }
  0xe8   : > { %v485_v27 = vld [vmem:[#allocation8 + $0x20] sm:$0xff]  ;;  %v484_v29 = vld [vmem:[#allocation8 + $0x18] sm:$0xff]  ;;  %v483_v30 = vld [vmem:[#allocation8 + $0x10] sm:$0xff] }
  0xe9   : > { %503 = vmatpush.msra.mxu0 %v494_v16  ;;  %v482_v32 = vld [vmem:[#allocation8 + $0x8] sm:$0xff]  ;;  %v481_v33 = vld [vmem:[#allocation8] sm:$0xff]  ;;  %v733_v35 = vld [vmem:[%s1165_s4] ss:$0 sm:$0xff] }
  0xea   : > { %v472_v26 = vld [vmem:[#allocation2] sm:$0xff] }
  0xeb   : > { %504 = vmatpush.msra.mxu0 %v493_v17  ;;  %v477_v28 = vadd.f32 %v732_v24, %v472_v26 }
  0xed   : > { %505 = vmatpush.msra.mxu0 %v492_v18  ;;  %v479_v31 = vmul.f32 0.01, %v477_v28  ;;  %vm478_vm0 = vcmp.gt.f32.partialorder %v477_v28, 0.0 }
  0xef   : > { %506 = vmatpush.msra.mxu0 %v491_v19  ;;  %v480_v34 = vsel %vm478_vm0, %v477_v28, %v479_v31 }
  0xf1   : > { %507 = vmatpush.msra.mxu0 %v490_v20 }
  0xf3   : > { %508 = vmatpush.msra.mxu0 %v489_v21 }
  0xf5   : > { %509 = vmatpush.msra.mxu0 %v488_v22 }
  0xf7   : > { %510 = vmatpush.msra.mxu0 %v487_v23 }
  0xf9   : > { %511 = vmatpush.msra.mxu0 %v486_v25 }
  0xfb   : > { %512 = vmatpush.msra.mxu0 %v485_v27 }
  0xfd   : > { %513 = vmatpush.msra.mxu0 %v484_v29 }
  0xff   : > { %514 = vmatpush.msra.mxu0 %v483_v30 }
 0x101   : > { %515 = vmatpush.msra.mxu0 %v482_v32 }
 0x103   : > { %516 = vmatpush.msra.mxu0 %v481_v33 }
 0x104   : > { %517 = vmatmul.f32.vlgmr.msra.gmra.mxu0 %v480_v34 }
 0x181   : > { %v518_v36 = vpop.f32.mrf.mxu0 }
 0x182   : > { %v519_v37 = vadd.f32 %v733_v35, %v518_v36 }
 0x184   : > { %521 = vst [vmem:[#allocation9] sm:$0xff] %v519_v37 }
 0x185 PF: > { %p677_p3 = scmp.eq.s32.totalorder %s982_s24, 1  ;;  %s532_s11 = sshll.u32 %s1166_s5, 4  ;;  %s533_s11 = int_to_ptr.hbm [resolvable:$true] %s532_s11 }
 0x186   : > { %s920_s9 = smov [#allocation9]  }
 0x187   : > { %s530_s14 = sshll.u32 %s920_s9, 4  ;;  %s531_s14 = int_to_ptr.vmem [resolvable:$true] %s530_s14 }
 0x188   : > { %660 = dma.vmem_to_hbm [thread:$0]  (%p677_p3), %s531_s14, 128, %s533_s11, [#allocation5]  }
 0x189   : > { %889 = dma.done.wait (%p677_p3), [#allocation5], 128  }
 0x18a   : > { %891 = vsyncadd (%p677_p3), [#allocation5], 4294967168 }
 0x18b PF: > { %s22_s23 = sadd.s32 1, %s914_s23   ;;  %s1179_s17 = sld [smem:[#allocation15_spill]] }
 0x18c   : > { %p19_p4 = scmp.ge.s32.totalorder %s22_s23, 4   ;;  %s1180_s24 = sld [smem:[#allocation14_spill]] }
 0x18d   : > { %s1181_s18 = smov %s898_s19  ;;  %s1182_s19 = smov %s902_s20 }
 0x18e   : > { %s1184_s21 = smov %s910_s22  ;;  %21 = sbr.rel (!%p19_p4) target bundleno = 9 (0x9), region = 103 }
 0x191   : > { %s1183_s20 = smov %s1179_s17 }
 0x192   : > { %s1185_s22 = smov %s1180_s24 }
 0x193   :  { %546 = vsyncpa [#allocation4], 1 }
 0x194   :  { %548 = vsyncpa [#allocation4 + $0x1], 1 }
 0x195   :  { %549 = vsyncpa [#allocation7], 1 }
 0x196   :  { %551 = vsyncpa [#allocation7 + $0x1], 1 }
 0x197   :  { %552 = vsyncpa [#allocation5], 1 }
 0x198   :  { %554 = vsyncpa [#allocation5 + $0x1], 1 }

</bundles_post_ra>
